<compile_context>
chip_gen: v5e
topology: v5e:2x2
jax: 0.10.0
libtpu: 0.0.40
codegen_flags: <defaults>
</compile_context>

<pallas_src>
import functools

import jax
import jax.numpy as jnp
from jax.experimental import pallas as pl
from jax.experimental.pallas import tpu as pltpu

_K = 3  # the module hard-codes kernel_size=3, padding=1


def _round_up(x, m):
    return (x + m - 1) // m * m


# ----------------------------------------------------------------------------
# Fused kernel: conv3x3 + bias + ReLU + conv1x1 + bias for one (batch, row-block).
# ----------------------------------------------------------------------------
def _seg_head_kernel(x_cur_ref, x_nxt_ref, w1_ref, b1_ref, w2_ref, b2_ref,
                     o_ref, *, rh, out_w):
    """Computes out[b, hi*RH : hi*RH+RH, :, :] for the current grid step.

    x_cur_ref : (1, RH, W+2, Cin) bf16  -- padded rows [hi*RH, hi*RH+RH)
    x_nxt_ref : (1, RH, W+2, Cin) bf16  -- padded rows [hi*RH+RH, hi*RH+2*RH)
    w1_ref    : (9*Cin, C1) bf16        -- 3x3 weights, (kh, kw, cin)-major
    b1_ref    : (1, C1)     f32
    w2_ref    : (C1, C2p)   bf16        -- 1x1 weights, lane-padded to 128
    b2_ref    : (1, C2p)    f32
    o_ref     : (1, RH, W, C2p) f32
    """
    # The RH+2 padded rows this row-block needs (bottom halo from next block).
    xwin = jnp.concatenate([x_cur_ref[0], x_nxt_ref[0, :2]], axis=0)  # (RH+2, W+2, Cin)

    # Fold all 9 taps into the contraction dim: one deep matmul instead of
    # nine depth-Cin ones.  Channel order (kh, kw, cin) matches w1 packing.
    cols = []
    for kh in range(_K):
        for kw in range(_K):
            cols.append(xwin[kh:kh + rh, kw:kw + out_w, :])   # (RH, W, Cin) static slices
    xcol = jnp.concatenate(cols, axis=-1)                     # (RH, W, 9*Cin) bf16
    xcol = xcol.reshape(rh * out_w, xcol.shape[-1])           # (RH*W, 9*Cin)

    acc = jnp.dot(xcol, w1_ref[...], preferred_element_type=jnp.float32)
    y = jnp.maximum(acc + b1_ref[...], 0.0)                   # bias + ReLU in f32

    out = jnp.dot(y.astype(jnp.bfloat16), w2_ref[...],
                  preferred_element_type=jnp.float32) + b2_ref[...]
    o_ref[0] = out.reshape(rh, out_w, -1).astype(o_ref.dtype)


# ----------------------------------------------------------------------------
# Parameters (deterministic synthetic init, packed once for the kernel)
# ----------------------------------------------------------------------------
def init_params(key, input_channels, num_classes=2, hidden=256):
    k1, k2, k3, k4 = jax.random.split(key, 4)
    w1 = jax.random.normal(k1, (_K, _K, input_channels, hidden), jnp.float32) * (
        2.0 / (_K * _K * input_channels)) ** 0.5
    b1 = 0.05 * jax.random.normal(k2, (hidden,), jnp.float32)
    w2 = jax.random.normal(k3, (hidden, num_classes), jnp.float32) * (2.0 / hidden) ** 0.5
    b2 = 0.05 * jax.random.normal(k4, (num_classes,), jnp.float32)
    return {"w1": w1, "b1": b1, "w2": w2, "b2": b2}


def prepare_params(params):
    """One-time packing: bf16 cast, tap-folded reshape, 128-lane output pad."""
    w1 = params["w1"]
    kh, kw, cin, c1 = w1.shape
    c2 = params["w2"].shape[1]
    c2p = _round_up(max(c2, 128), 128)
    w1p = w1.reshape(kh * kw * cin, c1).astype(jnp.bfloat16)   # (9*Cin, C1)
    b1p = params["b1"].reshape(1, c1).astype(jnp.float32)
    w2p = jnp.zeros((c1, c2p), jnp.bfloat16).at[:, :c2].set(
        params["w2"].astype(jnp.bfloat16))
    b2p = jnp.zeros((1, c2p), jnp.float32).at[0, :c2].set(params["b2"])
    return {"w1": w1p, "b1": b1p, "w2": w2p, "b2": b2p, "num_classes": c2}


# ----------------------------------------------------------------------------
# Forward pass (NCHW in / NCHW out, like the nn.Module)
# ----------------------------------------------------------------------------
def segmentation_head_forward(packed, x_nchw):
    w1p, b1p, w2p, b2p = packed["w1"], packed["b1"], packed["w2"], packed["b2"]
    num_classes = packed["num_classes"]
    pad = _K // 2

    x = jnp.transpose(x_nchw, (0, 2, 3, 1)).astype(jnp.bfloat16)   # NHWC bf16
    b, h, w, cin = x.shape
    c1 = w2p.shape[0]
    c2p = w2p.shape[1]

    # Row-block size: >= 2 so the next block always contains the bottom halo,
    # capped so per-step VMEM (RH*W x 256 f32 intermediate) stays modest.
    rh = max(2, min(8, h, max(2, 2048 // max(w, 1))))
    hb = _round_up(h, rh)            # row-padded output height
    nhb = hb // rh

    # Padded input: 1 zero row on top; enough zero rows below so the halo spec
    # (block index hi+1) never reads out of range.  Width padded by 1 each side.
    h_in = hb + rh                   # = (nhb + 1) * rh
    wp = w + 2 * pad
    xp = jnp.zeros((b, h_in, wp, cin), jnp.bfloat16)
    xp = xp.at[:, pad:pad + h, pad:pad + w, :].set(x)

    out = pl.pallas_call(
        functools.partial(_seg_head_kernel, rh=rh, out_w=w),
        out_shape=jax.ShapeDtypeStruct((b, hb, w, c2p), jnp.float32),
        grid=(b, nhb),
        in_specs=[
            pl.BlockSpec((1, rh, wp, cin), lambda bi, hi: (bi, hi, 0, 0)),
            pl.BlockSpec((1, rh, wp, cin), lambda bi, hi: (bi, hi + 1, 0, 0)),
            pl.BlockSpec((_K * _K * cin, c1), lambda bi, hi: (0, 0)),
            pl.BlockSpec((1, c1), lambda bi, hi: (0, 0)),
            pl.BlockSpec((c1, c2p), lambda bi, hi: (0, 0)),
            pl.BlockSpec((1, c2p), lambda bi, hi: (0, 0)),
        ],
        out_specs=pl.BlockSpec((1, rh, w, c2p), lambda bi, hi: (bi, hi, 0, 0)),
        compiler_params=pltpu.CompilerParams(
            dimension_semantics=("parallel", "parallel")),
    )(xp, xp, w1p, b1p, w2p, b2p)

    out = out[:, :h, :, :num_classes]                 # drop row + lane padding
    return jnp.transpose(out, (0, 3, 1, 2))           # back to NCHW


# ----------------------------------------------------------------------------
# Pure-JAX reference (same bf16-rounded operands, f32 accumulation).
# ----------------------------------------------------------------------------
def _reference_forward(params, x_nchw):
    rd = lambda t: t.astype(jnp.bfloat16).astype(jnp.float32)
    w1, b1 = rd(params["w1"]), params["b1"]
    w2, b2 = rd(params["w2"]), params["b2"]
    x = rd(jnp.transpose(x_nchw, (0, 2, 3, 1)))
    bsz, h, w, cin = x.shape
    xp = jnp.pad(x, ((0, 0), (1, 1), (1, 1), (0, 0)))
    acc = jnp.zeros((bsz, h, w, w1.shape[-1]), jnp.float32)
    for kh in range(_K):
        for kw in range(_K):
            acc += jnp.einsum("bhwc,cd->bhwd",
                              xp[:, kh:kh + h, kw:kw + w, :], w1[kh, kw],
                              precision="highest")
    y = jnp.maximum(acc + b1, 0.0)
    out = jnp.einsum("bhwc,cd->bhwd", rd(y), w2, precision="highest") + b2
    return jnp.transpose(out, (0, 3, 1, 2))


# ----------------------------------------------------------------------------
if __name__ == "__main__":
    key = jax.random.PRNGKey(0)
    pkey, xkey = jax.random.split(key)

    input_channels, num_classes = 4, 2
    params = init_params(pkey, input_channels, num_classes)
    packed = prepare_params(params)

    # Small input consistent with the module: NCHW (2, 4, 16, 16)
    x = jax.random.normal(xkey, (2, input_channels, 16, 16), jnp.float32)

    fwd = jax.jit(functools.partial(segmentation_head_forward, packed))
    out = jax.block_until_ready(fwd(x))

    assert out.shape == (2, num_classes, 16, 16), out.shape
    assert bool(jnp.all(jnp.isfinite(out)))

    ref = _reference_forward(params, x)
    max_err = float(jnp.max(jnp.abs(out - ref)))
    scale = float(jnp.max(jnp.abs(ref))) + 1e-6
    assert max_err <= 5e-2 * scale + 1e-3, (max_err, scale)

    print("KERNEL_OK")
</pallas_src>

<mosaic_0001>
module attributes {stable_mosaic.version = 11 : i64} {
  func.func @_seg_head_kernel(%arg0: i32, %arg1: i32, %arg2: memref<1x8x18x4xbf16, #tpu.memory_space<vmem>>, %arg3: memref<1x8x18x4xbf16, #tpu.memory_space<vmem>>, %arg4: memref<36x256xbf16, #tpu.memory_space<vmem>>, %arg5: memref<1x256xf32, #tpu.memory_space<vmem>>, %arg6: memref<256x128xbf16, #tpu.memory_space<vmem>>, %arg7: memref<1x128xf32, #tpu.memory_space<vmem>>, %arg8: memref<1x8x16x128xf32, #tpu.memory_space<vmem>>) attributes {dimension_semantics = [#tpu.dimension_semantics<parallel>, #tpu.dimension_semantics<parallel>], iteration_bounds = array<i64: 2, 2>, scalar_prefetch = 0 : i64, scratch_operands = 0 : i64, tpu.core_type = #tpu.core_type<tc>, window_params = [{transform_indices = @transform_0, window_bounds = array<i64: 1, 8, 18, 4>}, {transform_indices = @transform_1, window_bounds = array<i64: 1, 8, 18, 4>}, {pipeline_mode = #tpu.pipeline_mode<synchronous>, transform_indices = @transform_2, window_bounds = array<i64: 36, 256>}, {pipeline_mode = #tpu.pipeline_mode<synchronous>, transform_indices = @transform_3, window_bounds = array<i64: 1, 256>}, {pipeline_mode = #tpu.pipeline_mode<synchronous>, transform_indices = @transform_4, window_bounds = array<i64: 256, 128>}, {pipeline_mode = #tpu.pipeline_mode<synchronous>, transform_indices = @transform_5, window_bounds = array<i64: 1, 128>}, {transform_indices = @transform_6, window_bounds = array<i64: 1, 8, 16, 128>}]} {
    %c0 = arith.constant 0 : index
    %c0_0 = arith.constant 0 : index
    %c0_1 = arith.constant 0 : index
    %c0_2 = arith.constant 0 : index
    %0 = vector.load %arg2[%c0, %c0_0, %c0_1, %c0_2] : memref<1x8x18x4xbf16, #tpu.memory_space<vmem>>, vector<1x8x18x4xbf16>
    %1 = vector.shape_cast %0 : vector<1x8x18x4xbf16> to vector<8x18x4xbf16>
    %c0_3 = arith.constant 0 : index
    %c0_4 = arith.constant 0 : index
    %c0_5 = arith.constant 0 : index
    %c0_6 = arith.constant 0 : index
    %2 = vector.load %arg3[%c0_3, %c0_4, %c0_5, %c0_6] : memref<1x8x18x4xbf16, #tpu.memory_space<vmem>>, vector<1x2x18x4xbf16>
    %3 = vector.shape_cast %2 : vector<1x2x18x4xbf16> to vector<2x18x4xbf16>
    %4 = tpu.concatenate %1, %3 in 0 : vector<8x18x4xbf16>, vector<2x18x4xbf16> -> vector<10x18x4xbf16>
    %5 = vector.extract_strided_slice %4 {offsets = [0, 0, 0], sizes = [8, 16, 4], strides = [1, 1, 1]} : vector<10x18x4xbf16> to vector<8x16x4xbf16>
    %6 = vector.extract_strided_slice %4 {offsets = [0, 1, 0], sizes = [8, 16, 4], strides = [1, 1, 1]} : vector<10x18x4xbf16> to vector<8x16x4xbf16>
    %7 = vector.extract_strided_slice %4 {offsets = [0, 2, 0], sizes = [8, 16, 4], strides = [1, 1, 1]} : vector<10x18x4xbf16> to vector<8x16x4xbf16>
    %8 = vector.extract_strided_slice %4 {offsets = [1, 0, 0], sizes = [8, 16, 4], strides = [1, 1, 1]} : vector<10x18x4xbf16> to vector<8x16x4xbf16>
    %9 = vector.extract_strided_slice %4 {offsets = [1, 1, 0], sizes = [8, 16, 4], strides = [1, 1, 1]} : vector<10x18x4xbf16> to vector<8x16x4xbf16>
    %10 = vector.extract_strided_slice %4 {offsets = [1, 2, 0], sizes = [8, 16, 4], strides = [1, 1, 1]} : vector<10x18x4xbf16> to vector<8x16x4xbf16>
    %11 = vector.extract_strided_slice %4 {offsets = [2, 0, 0], sizes = [8, 16, 4], strides = [1, 1, 1]} : vector<10x18x4xbf16> to vector<8x16x4xbf16>
    %12 = vector.extract_strided_slice %4 {offsets = [2, 1, 0], sizes = [8, 16, 4], strides = [1, 1, 1]} : vector<10x18x4xbf16> to vector<8x16x4xbf16>
    %13 = vector.extract_strided_slice %4 {offsets = [2, 2, 0], sizes = [8, 16, 4], strides = [1, 1, 1]} : vector<10x18x4xbf16> to vector<8x16x4xbf16>
    %14 = tpu.concatenate %5, %6, %7, %8, %9, %10, %11, %12, %13 in 2 : vector<8x16x4xbf16>, vector<8x16x4xbf16>, vector<8x16x4xbf16>, vector<8x16x4xbf16>, vector<8x16x4xbf16>, vector<8x16x4xbf16>, vector<8x16x4xbf16>, vector<8x16x4xbf16>, vector<8x16x4xbf16> -> vector<8x16x36xbf16>
    %15 = vector.shape_cast %14 : vector<8x16x36xbf16> to vector<128x36xbf16>
    %c0_7 = arith.constant 0 : index
    %c0_8 = arith.constant 0 : index
    %16 = vector.load %arg4[%c0_7, %c0_8] : memref<36x256xbf16, #tpu.memory_space<vmem>>, vector<36x256xbf16>
    %cst = arith.constant dense<0.000000e+00> : vector<128x256xf32>
    %17 = tpu.matmul %15, %16, %cst {dimension_numbers = #tpu.dot_dimension_numbers<[1], [0], [0], [1], [0, 0, 1, 1], [], []>} : vector<128x36xbf16>, vector<36x256xbf16>, vector<128x256xf32> -> vector<128x256xf32>
    %c0_9 = arith.constant 0 : index
    %c0_10 = arith.constant 0 : index
    %18 = vector.load %arg5[%c0_9, %c0_10] : memref<1x256xf32, #tpu.memory_space<vmem>>, vector<1x256xf32>
    %19 = vector.broadcast %18 : vector<1x256xf32> to vector<128x256xf32>
    %20 = arith.addf %17, %19 : vector<128x256xf32>
    %cst_11 = arith.constant 0.000000e+00 : f32
    %21 = vector.broadcast %cst_11 : f32 to vector<128x256xf32>
    %22 = arith.maximumf %20, %21 : vector<128x256xf32>
    %23 = arith.truncf %22 : vector<128x256xf32> to vector<128x256xbf16>
    %c0_12 = arith.constant 0 : index
    %c0_13 = arith.constant 0 : index
    %24 = vector.load %arg6[%c0_12, %c0_13] : memref<256x128xbf16, #tpu.memory_space<vmem>>, vector<256x128xbf16>
    %cst_14 = arith.constant dense<0.000000e+00> : vector<128x128xf32>
    %25 = tpu.matmul %23, %24, %cst_14 {dimension_numbers = #tpu.dot_dimension_numbers<[1], [0], [0], [1], [0, 0, 1, 1], [], []>} : vector<128x256xbf16>, vector<256x128xbf16>, vector<128x128xf32> -> vector<128x128xf32>
    %c0_15 = arith.constant 0 : index
    %c0_16 = arith.constant 0 : index
    %26 = vector.load %arg7[%c0_15, %c0_16] : memref<1x128xf32, #tpu.memory_space<vmem>>, vector<1x128xf32>
    %27 = vector.broadcast %26 : vector<1x128xf32> to vector<128x128xf32>
    %28 = arith.addf %25, %27 : vector<128x128xf32>
    %29 = vector.shape_cast %28 : vector<128x128xf32> to vector<8x16x128xf32>
    %c0_17 = arith.constant 0 : index
    %c0_18 = arith.constant 0 : index
    %c0_19 = arith.constant 0 : index
    %c0_20 = arith.constant 0 : index
    %30 = vector.load %arg8[%c0_17, %c0_18, %c0_19, %c0_20] : memref<1x8x16x128xf32, #tpu.memory_space<vmem>>, vector<1x8x16x128xf32>
    %31 = vector.shape_cast %30 : vector<1x8x16x128xf32> to vector<8x16x128xf32>
    %32 = vector.shape_cast %29 : vector<8x16x128xf32> to vector<1x8x16x128xf32>
    tpu.vector_store %arg8[%c0_17, %c0_18, %c0_19, %c0_20], %32 {strides = array<i32>} : memref<1x8x16x128xf32, #tpu.memory_space<vmem>>, vector<1x8x16x128xf32>,
    return
  }
  func.func @transform_0(%arg0: i32, %arg1: i32) -> (i32, i32, i32, i32) {
    %c0_i32 = arith.constant 0 : i32
    %c0_i32_0 = arith.constant 0 : i32
    %c0_i32_1 = arith.constant 0 : i32
    return %arg0, %arg1, %c0_i32, %c0_i32_0 : i32, i32, i32, i32
  }
  func.func @transform_1(%arg0: i32, %arg1: i32) -> (i32, i32, i32, i32) {
    %c1_i32 = arith.constant 1 : i32
    %0 = arith.addi %arg1, %c1_i32 : i32
    %c0_i32 = arith.constant 0 : i32
    %c0_i32_0 = arith.constant 0 : i32
    %c0_i32_1 = arith.constant 0 : i32
    return %arg0, %0, %c0_i32, %c0_i32_0 : i32, i32, i32, i32
  }
  func.func @transform_2(%arg0: i32, %arg1: i32) -> (i32, i32) {
    %c0_i32 = arith.constant 0 : i32
    %c0_i32_0 = arith.constant 0 : i32
    %c0_i32_1 = arith.constant 0 : i32
    return %c0_i32, %c0_i32_0 : i32, i32
  }
  func.func @transform_3(%arg0: i32, %arg1: i32) -> (i32, i32) {
    %c0_i32 = arith.constant 0 : i32
    %c0_i32_0 = arith.constant 0 : i32
    %c0_i32_1 = arith.constant 0 : i32
    return %c0_i32, %c0_i32_0 : i32, i32
  }
  func.func @transform_4(%arg0: i32, %arg1: i32) -> (i32, i32) {
    %c0_i32 = arith.constant 0 : i32
    %c0_i32_0 = arith.constant 0 : i32
    %c0_i32_1 = arith.constant 0 : i32
    return %c0_i32, %c0_i32_0 : i32, i32
  }
  func.func @transform_5(%arg0: i32, %arg1: i32) -> (i32, i32) {
    %c0_i32 = arith.constant 0 : i32
    %c0_i32_0 = arith.constant 0 : i32
    %c0_i32_1 = arith.constant 0 : i32
    return %c0_i32, %c0_i32_0 : i32, i32
  }
  func.func @transform_6(%arg0: i32, %arg1: i32) -> (i32, i32, i32, i32) {
    %c0_i32 = arith.constant 0 : i32
    %c0_i32_0 = arith.constant 0 : i32
    %c0_i32_1 = arith.constant 0 : i32
    return %arg0, %arg1, %c0_i32, %c0_i32_0 : i32, i32, i32, i32
  }
}

</mosaic_0001>

<bundles_post_ra>
// kernel: segmentation_head_forward.1
= control target key start
LH: loop header
LB: loop body
LE: loop exit
PB: predicated region body
PF: predicated region fallthrough
CT: control target
= control target key end

     0   :  { %s1759_s21 = smov 0   ;;  %s1761_s22 = smov 0   ;;  %s2255_s0 = inlined_call_operand.vmem [shape: bf16[2,24,18,4], index: 0, kind: input, shape index: {}, may-alias: {0,1}]   ;;  %s2256_s1 = inlined_call_operand.vmem [shape: bf16[2,24,18,4], index: 1, kind: input, shape index: {}, may-alias: {0,1}]   ;;  %s2257_s2 = inlined_call_operand.vmem [shape: bf16[36,256], index: 2, kind: input, shape index: {}]   ;;  %s2258_s3 = inlined_call_operand.vmem [shape: f32[1,256], index: 3, kind: input, shape index: {}]   ;;  %s2259_s4 = inlined_call_operand.vmem [shape: bf16[256,128], index: 4, kind: input, shape index: {}]   ;;  %s2260_s5 = inlined_call_operand.vmem [shape: f32[1,128], index: 5, kind: input, shape index: {}]   ;;  %s2261_s6 = inlined_call_operand.vmem [shape: f32[2,16,16,128], index: 6, kind: output, shape index: {}]  }
   0x1   :  { %s1763_s23 = smov 0   ;;  %s1765_s24 = smov 0  }
   0x2   :  { %s1767_s25 = smov 0  }
   0x3 LB: > { %s25_s26 = sadd.s32 1, %s1706_s23  ;;  %s28_s27 = sadd.s32 1, %s1710_s24  ;;  %s1714_s25 = sphi %s1767_s25, %s16_s25   ;;  %s1710_s24 = sphi %s1765_s24, %s2268_s24   ;;  %s1706_s23 = sphi %s1763_s23, %s2267_s23   ;;  %s1702_s22 = sphi %s1761_s22, %s2266_s22   ;;  %s1698_s21 = sphi %s1759_s21, %s2265_s21  }
   0x4   : > { %p26_p0 = scmp.ge.s32.totalorder %s25_s26, 2  ;;  %p1445_p1 = scmp.ge.s32.totalorder %s1714_s25, 1 }
   0x5   : > { %p256_p2 = scmp.lt.s32.totalorder %s1714_s25, 5 }
   0x6   : > { %s2270_s26 = smov (%p26_p0, %s25_s26), 0  ;;  %s2272_s27 = smov (!%p26_p0, %s28_s27), %s1710_s24 }
   0x7   : > { %p257_p3 = pnand %p1445_p1, %p256_p2  ;;  %p30_p4 = scmp.ge.s32.totalorder %s2272_s27, 2 }
   0x8   : > { %s1789_s28 = sshll.u32 (!%p257_p3), %s1698_s21, 3  ;;  %p308_p5 = scmp.lt.s32.totalorder (!%p257_p3), %s1702_s22, 1 }
   0x9   : > { %s2274_s27 = smov (%p30_p4, %s2272_s27), 0  ;;  %260 = sbr.rel (%p257_p3) target bundleno = 600 (0x258), region = 44 }
   0xa   : > { %p310_p6 = scmp.lt.s32.totalorder (!%p257_p3), %s1789_s28, 23  ;;  %s1716_s13 = smov (!%p257_p3), 12  }
   0xb   : > { %s2262_s14 = smov (!%p257_p3), 24   ;;  %s1718_s15 = smov (!%p257_p3), 8  }
   0xc   : > { %s1719_s16 = smov (!%p257_p3), 32   ;;  %s1720_s17 = smov (!%p257_p3), 20  }
   0xd   : > { %s1721_s18 = smov (!%p257_p3), 4   ;;  %s1722_s19 = smov (!%p257_p3), 16  }
   0xe   : > { %s2276_s22 = smov (!%p308_p5, %s1702_s22), 1  ;;  %vm550_vm0 = vcmask 1046528   ;;  %vm437_vm1 = vsmask.f32 7424  ;;  %s1723_s20 = smov 28   ;;  %vm922_vm2 = vcmask 1041408  }
   0xf   : > { %s311_s29 = scalar_select %p310_p6, %s1789_s28, 23  ;;  %vm733_vm3 = vcmask 31744   ;;  %vm750_vm4 = vcmask 64512   ;;  %vm767_vm5 = vcmask 97280   ;;  %vm784_vm6 = vcmask 130048  }
  0x10   : > { %s1625_s30 = smul.u32 72, %s2276_s22  ;;  %vm801_vm7 = vcmask 162816   ;;  %vm818_vm8 = vcmask 195584   ;;  %vm835_vm9 = vcmask 228352   ;;  %vm852_vm10 = vcmask 261120   ;;  %p334_p8 = scmp.lt.s32.totalorder %s1789_s28, 15 }
  0x11   : > { %s1624_s7 = smul.u32 3, %s311_s29  ;;  %s1593_s29 = sadd.s32 8, %s1789_s28  ;;  %vm905_vm11 = vcmask 293888  }
  0x12   : > { %p322_p7 = scmp.lt.s32.totalorder %s1593_s29, 23  ;;  %s2280_s28 = smov (!%p334_p8, %s1789_s28), 15 }
  0x13   : > { %s314_s8 = sadd.s32 %s1625_s30, %s1624_s7 }
  0x14   : > { %s1447_s9 = sshll.u32 %s314_s8, 2  ;;  %s2278_s29 = smov (!%p322_p7, %s1593_s29), 23 }
  0x15   : > { %s1801_s12 = scalar_lea.vmem %s2255_s0, %s1447_s9  ;;  %s1626_s7 = smul.u32 3, %s2278_s29 }
  0x16   : > { %v1804_v0 = vld [vmem:[%s1801_s12 + $0xc] sm:$0xff]  ;;  %v1807_v1 = vld [vmem:[%s1801_s12] sm:$0xff]  ;;  %v345_v2 = vld [vmem:[%s1801_s12 + $0x8] sm:$0x1] }
  0x17   : > { %v421_v3 = vunpack.c.l.b16 %v345_v2  ;;  %v1811_v4 = vld [vmem:[%s1801_s12 + $0x18] sm:$0xff]  ;;  %v351_v5 = vld [vmem:[%s1801_s12 + $0x20] sm:$0x1]  ;;  %v348_v6 = vld [vmem:[%s1801_s12 + $0x14] sm:$0x1]  ;;  %596 = vrot.lane.b32.xlu1 %v1804_v0, %s1716_s13  ;;  %v441_v8 = vshll.u32 %v1807_v1, 16  ;;  %s326_s8 = sadd.s32 %s1626_s7, %s1625_s30 }
  0x18   : > { %v423_v7 = vunpack.c.l.b16 %v351_v5  ;;  %v551_v10 = vrot.slane %v1807_v1, 1  ;;  %v422_v11 = vunpack.c.l.b16 %v348_v6  ;;  %667 = vrot.lane.b32.xlu2 %v1811_v4, %s2262_s14  ;;  %v557_v13 = vrot.slane %v1811_v4, 1  ;;  %v354_v41 = vld [vmem:[%s1801_s12 + $0x2c] sm:$0x1]  ;;  %v1842_v43 = vld [vmem:[%s1801_s12 + $0x24] sm:$0xff]  ;;  %v1857_v54 = vld [vmem:[%s1801_s12 + $0x30] sm:$0xff] }
  0x19   : > { %v429_v9 = vpack.c.b16 %v421_v3, %v421_v3  ;;  %v439_v14 = vshrl.u32 %v1807_v1, 16  ;;  %v453_v15 = vshll.u32 %v1804_v0, 16  ;;  %v443_v17 = vrot.slane %v441_v8, 1  ;;  %v357_v53 = vld [vmem:[%s1801_s12 + $0x38] sm:$0x1]  ;;  %s1449_s9 = sshll.u32 %s326_s8, 2 }
  0x1a   : > { %v431_v12 = vpack.c.b16 %v423_v7, %v423_v7  ;;  %v430_v19 = vpack.c.b16 %v422_v11, %v422_v11  ;;  %v451_v22 = vshrl.u32 %v1804_v0, 16  ;;  %v554_v26 = vrot.slane %v1804_v0, 1  ;;  %s1451_s30 = sshll.u32 %s2280_s28, 1 }
  0x1b   : > { %v552_v16 = vrot.slane %v429_v9, 1  ;;  %v446_v18 = vshll.u32 %v429_v9, 16  ;;  %v455_v23 = vrot.slane %v453_v15, 1  ;;  %v444_v27 = vor.u32 %v443_v17, %v439_v14  ;;  %v360_v9 = vld [vmem:[%s1801_s12 + $0x44] sm:$0x1] }
  0x1c   : > { %v558_v20 = vrot.slane %v431_v12, 1  ;;  %v458_v24 = vshll.u32 %v430_v19, 16  ;;  %v465_v29 = vshll.u32 %v1811_v4, 16  ;;  %v555_v30 = vrot.slane %v430_v19, 1 }
  0x1d   : > { %v553_v21 = vsel %vm550_vm0, %v551_v10, %v552_v16  ;;  %v448_v28 = vrot.slane %v446_v18, 1  ;;  %v456_v31 = vor.u32 %v455_v23, %v451_v22  ;;  %v463_v35 = vshrl.u32 %v1811_v4, 16  ;;  %v1883_v10 = vld [vmem:[%s1801_s12 + $0x3c] sm:$0xff]  ;;  %v363_v22 = vld [vmem:[%s1801_s12 + $0x50] sm:$0x1] }
  0x1e   : > { %575 = vrot.lane.b32.xlu0 %v553_v21, %s1718_s15  ;;  %v559_v25 = vsel %vm550_vm0, %v557_v13, %v558_v20  ;;  %v460_v32 = vrot.slane %v458_v24, 1  ;;  %v556_v33 = vsel %vm550_vm0, %v554_v26, %v555_v30  ;;  %v467_v36 = vrot.slane %v465_v29, 1  ;;  %v1899_v24 = vld [vmem:[%s1801_s12 + $0x48] sm:$0xff] }
  0x1f   : > { %717 = vrot.lane.b32.xlu1 %v559_v25, %s1719_s16  ;;  %v449_v34 = vsel %vm437_vm1, %v444_v27, %v448_v28  ;;  %v470_v37 = vshll.u32 %v431_v12, 16  ;;  %v424_v44 = vunpack.c.l.b16 %v354_v41  ;;  %v477_v45 = vshll.u32 %v1842_v43, 16 }
  0x20   : > { %646 = vrot.lane.b32.xlu2 %v556_v33, %s1720_s17  ;;  %v461_v38 = vsel %vm437_vm1, %v456_v31, %v460_v32  ;;  %v468_v39 = vor.u32 %v467_v36, %v463_v35  ;;  %v475_v47 = vshrl.u32 %v1842_v43, 16  ;;  %v425_v55 = vunpack.c.l.b16 %v357_v53  ;;  %v873_v31 = vld [vmem:[%s2257_s2 + $0x20] sm:$0x33] }
  0x21   : > { %v472_v40 = vrot.slane %v470_v37, 1  ;;  %v432_v46 = vpack.c.b16 %v424_v44, %v424_v44  ;;  %v479_v48 = vrot.slane %v477_v45, 1  ;;  %v560_v56 = vrot.slane %v1842_v43, 1  ;;  %v1607_v44 = vld [vmem:[%s2257_s2 + $0x14] sm:$0xf0] }
  0x22   : > { %v433_v58 = vpack.c.b16 %v425_v55, %v425_v55  ;;  %v489_v59 = vshll.u32 %v1857_v54, 16  ;;  %v487_v61 = vshrl.u32 %v1857_v54, 16  ;;  %v563_v6 = vrot.slane %v1857_v54, 1  ;;  %v1606_v45 = vld [vmem:[%s2257_s2 + $0x14] sm:$0xf] }
  0x23   : > { %v473_v42 = vsel %vm437_vm1, %v468_v39, %v472_v40  ;;  %v482_v49 = vshll.u32 %v432_v46, 16  ;;  %v480_v50 = vor.u32 %v479_v48, %v475_v47  ;;  %v561_v57 = vrot.slane %v432_v46, 1  ;;  %v366_v46 = vld [vmem:[%s1801_s12 + $0x5c] sm:$0x1]  ;;  %v1496_v53 = vld [vmem:[%s2257_s2] sm:$0xf] }
  0x24   : > { %v491_v62 = vrot.slane %v489_v59, 1  ;;  %v494_v63 = vshll.u32 %v433_v58, 16  ;;  %v564_v7 = vrot.slane %v433_v58, 1  ;;  %v426_v11 = vunpack.c.l.b16 %v360_v9  ;;  %v1506_v48 = vld [vmem:[%s2257_s2 + $0x18] sm:$0xf0] }
  0x25   : > { %v484_v51 = vrot.slane %v482_v49, 1  ;;  %v562_v60 = vsel %vm550_vm0, %v560_v56, %v561_v57  ;;  %v501_v13 = vshll.u32 %v1883_v10, 16  ;;  %v566_v14 = vrot.slane %v1883_v10, 1  ;;  %v1605_v55 = vld [vmem:[%s2257_s2 + $0x4] sm:$0xf0] }
  0x26   : > { %534 = vrot.lane.b32.xlu0 %v449_v34, %s1721_s18  ;;  %v492_v2 = vor.u32 %v491_v62, %v487_v61  ;;  %v496_v3 = vrot.slane %v494_v63, 1  ;;  %v565_v8 = vsel %vm550_vm0, %v563_v6, %v564_v7  ;;  %v434_v12 = vpack.c.b16 %v426_v11, %v426_v11  ;;  %v1604_v56 = vld [vmem:[%s2257_s2 + $0x4] sm:$0xf]  ;;  %v1498_v58 = vld [vmem:[%s2257_s2 + $0x8] sm:$0xf0] }
  0x27   : > { %627 = vrot.lane.b32.xlu1 %v461_v38, %s1722_s19  ;;  %v485_v52 = vsel %vm437_vm1, %v480_v50, %v484_v51  ;;  %v499_v16 = vshrl.u32 %v1883_v10, 16  ;;  %v503_v17 = vrot.slane %v501_v13, 1  ;;  %v513_v26 = vshll.u32 %v1899_v24, 16  ;;  %v1934_v50 = vld [vmem:[%s1801_s12 + $0x54] sm:$0xff]  ;;  %s2264_s12 = smov 24  }
  0x28   : > { %536 = vrot.lane.b32.xlu2 %v461_v38, %s1721_s18  ;;  %v497_v5 = vsel %vm437_vm1, %v492_v2, %v496_v3  ;;  %v567_v15 = vrot.slane %v434_v12, 1  ;;  %v506_v18 = vshll.u32 %v434_v12, 16  ;;  %v511_v28 = vshrl.u32 %v1899_v24, 16 }
  0x29   : > { %v504_v20 = vor.u32 %v503_v17, %v499_v16  ;;  %v515_v29 = vrot.slane %v513_v26, 1  ;;  %v894_v34 = vunpack.c.h.b16 %v873_v31  ;;  %v1509_v49 = vor.u32 %v1606_v45, %v1506_v48 }
  0x2a   : > { %v568_v19 = vsel %vm550_vm0, %v566_v14, %v567_v15  ;;  %v508_v21 = vrot.slane %v506_v18, 1  ;;  %v1497_v57 = vor.u32 %v1605_v55, %v1496_v53  ;;  %v569_v59 = vrot.slane %v1899_v24, 1 }
  0x2b   : > { %v516_v35 = vor.u32 %v515_v29, %v511_v28  ;;  %v900_v38 = vpack.c.b16 %v894_v34, %v894_v34  ;;  %v1501_v61 = vor.u32 %v1604_v56, %v1498_v58  ;;  %v525_v63 = vshll.u32 %v1934_v50, 16 }
  0x2c   : > { %v509_v23 = vsel %vm437_vm1, %v504_v20, %v508_v21  ;;  %v572_v14 = vrot.slane %v1934_v50, 1 }
  0x2d   : > { %v927_v40 = vsel %vm922_vm2, %v900_v38, 0  ;;  %v527_v6 = vrot.slane %v525_v63, 1 }
  0x2e   : > { %698 = vrot.lane.b32.xlu0 %v473_v42, %s1723_s20  ;;  %983 = vmatpush.bf16.msra.mxu1 %v927_v40 }
  0x2f   : > { %598 = vrot.lane.b32.xlu1 %v1811_v4, %s1716_s13 }
  0x30   : > { %629 = vrot.lane.b32.xlu2 %v473_v42, %s1722_s19 }
  0x32   : > { %984 = vmatpush.bf16.msra.mxu1 %v1509_v49 }
  0x36   : > { %577 = vrot.lane.b32.xlu0 %v556_v33, %s1718_s15  ;;  %v893_v33 = vunpack.c.l.b16 %v873_v31  ;;  %985 = vmatpush.bf16.msra.mxu1 %v1501_v61 }
  0x37   : > { %669 = vrot.lane.b32.xlu1 %v1842_v43, %s2262_s14 }
  0x38   : > { %700 = vrot.lane.b32.xlu2 %v485_v52, %s1723_s20  ;;  %v899_v37 = vpack.c.b16 %v893_v33, %v893_v33 }
  0x3a   : > { %v924_v39 = vsel %vm922_vm2, %v899_v37, 0 }
  0x3b   : > { %934 = vmatpush.bf16.msra.mxu0 %v924_v39 }
  0x3e   : > { %648 = vrot.lane.b32.xlu0 %v559_v25, %s1720_s17 }
  0x3f   : > { %538 = vrot.lane.b32.xlu1 %v473_v42, %s1721_s18  ;;  %v1504_v42 = vld [vmem:[%s2257_s2 + $0x10] sm:$0xf] }
  0x40   : > { %579 = vrot.lane.b32.xlu2 %v559_v25, %s1718_s15  ;;  %v427_v25 = vunpack.c.l.b16 %v363_v22  ;;  %v1505_v47 = vor.u32 %v1607_v44, %v1504_v42 }
  0x42   : > { %v435_v27 = vpack.c.b16 %v427_v25, %v427_v25  ;;  %935 = vmatpush.bf16.msra.mxu0 %v1505_v47 }
  0x44   : > { %v518_v30 = vshll.u32 %v435_v27, 16 }
  0x46   : > { %719 = vrot.lane.b32.xlu0 %v562_v60, %s1719_s16  ;;  %v520_v36 = vrot.slane %v518_v30, 1  ;;  %936 = vmatpush.bf16.msra.mxu0 %v1497_v57 }
  0x47   : > { %631 = vrot.lane.b32.xlu1 %v485_v52, %s1722_s19 }
  0x48   : > { %650 = vrot.lane.b32.xlu2 %v562_v60, %s1720_s17  ;;  %v1916_v41 = vsel %vm437_vm1, %v516_v35, %v520_v36 }
  0x4e   : > { %600 = vrot.lane.b32.xlu0 %v1842_v43, %s1716_s13 }
  0x4f   : > { %702 = vrot.lane.b32.xlu1 %v497_v5, %s1723_s20 }
  0x50   : > { %721 = vrot.lane.b32.xlu2 %v565_v8, %s1719_s16 }
  0x56   : > { %671 = vrot.lane.b32.xlu0 %v1857_v54, %s2262_s14 }
  0x57   : > { %581 = vrot.lane.b32.xlu1 %v562_v60, %s1718_s15  ;;  %v570_v60 = vrot.slane %v435_v27, 1 }
  0x58   : > { %602 = vrot.lane.b32.xlu2 %v1857_v54, %s1716_s13 }
  0x59   : > { %v571_v2 = vsel %vm550_vm0, %v569_v59, %v570_v60 }
  0x5e   : > { %540 = vrot.lane.b32.xlu0 %v485_v52, %s1721_s18  ;;  %v428_v52 = vunpack.c.l.b16 %v366_v46 }
  0x5f   : > { %652 = vrot.lane.b32.xlu1 %v565_v8, %s1720_s17 }
  0x60   : > { %673 = vrot.lane.b32.xlu2 %v1883_v10, %s2262_s14  ;;  %v436_v62 = vpack.c.b16 %v428_v52, %v428_v52 }
  0x62   : > { %v530_v7 = vshll.u32 %v436_v62, 16  ;;  %v573_v15 = vrot.slane %v436_v62, 1 }
  0x64   : > { %v532_v9 = vrot.slane %v530_v7, 1  ;;  %v1974_v17 = vsel %vm550_vm0, %v572_v14, %v573_v15 }
  0x66   : > { %633 = vrot.lane.b32.xlu0 %v497_v5, %s1722_s19 }
  0x67   : > { %723 = vrot.lane.b32.xlu1 %v568_v19, %s1719_s16 }
  0x68   : > { %542 = vrot.lane.b32.xlu2 %v497_v5, %s1721_s18  ;;  %v523_v5 = vshrl.u32 %v1934_v50, 16 }
  0x6e   : > { %704 = vrot.lane.b32.xlu0 %v509_v23, %s1723_s20 }
  0x6f   : > { %604 = vrot.lane.b32.xlu1 %v1883_v10, %s1716_s13 }
  0x70   : > { %635 = vrot.lane.b32.xlu2 %v509_v23, %s1722_s19 }
  0x72   : > { %v1910_v32 = vpop.permute.xlu2 %667 }
  0x76   : > { %583 = vrot.lane.b32.xlu0 %v565_v8, %s1718_s15  ;;  %v528_v8 = vor.u32 %v527_v6, %v523_v5 }
  0x77   : > { %675 = vrot.lane.b32.xlu1 %v1899_v24, %s2262_s14  ;;  %s1981_s14 = scalar_lea.vmem %s2256_s1, %s1449_s9 }
  0x78   : > { %706 = vrot.lane.b32.xlu2 %v1916_v41, %s1723_s20  ;;  %v533_v13 = vsel %vm437_vm1, %v528_v8, %v532_v9  ;;  %v369_v21 = vld [vmem:[%s1981_s14 + $0x8] sm:$0x1]  ;;  %v1602_v27 = vld [vmem:[%s1981_s14] sm:$0xff]  ;;  %v372_v55 = vld [vmem:[%s1981_s14 + $0x14] sm:$0x1] }
  0x79   : > { %v613_v28 = vunpack.c.l.b16 %v369_v21  ;;  %v618_v31 = vshll.u32 %v1602_v27, 16  ;;  %v643_v37 = vrot.slane %v1602_v27, 1  ;;  %v684_v57 = vunpack.c.l.b16 %v372_v55  ;;  %v1603_v58 = vld [vmem:[%s1981_s14 + $0xc] sm:$0xff]  ;;  %v1615_v55 = vld [vmem:[%s2259_s4 + $0x38] sm:$0xff] }
  0x7a   : > { %v1936_v51 = vpop.permute.xlu2 %646  ;;  %v689_v60 = vshll.u32 %v1603_v58, 16  ;;  %1207 = vmatpush.bf16.msra.mxu2 %v1615_v55 }
  0x7b   : > { %v685_v63 = vpack.c.b16 %v684_v57, %v684_v57 }
  0x7d   : > { %v694_v6 = vshll.u32 %v685_v63, 16 }
  0x7e   : > { %654 = vrot.lane.b32.xlu0 %v568_v19, %s1720_s17 }
  0x7f   : > { %544 = vrot.lane.b32.xlu1 %v509_v23, %s1721_s18  ;;  %v696_v9 = vrot.slane %v694_v6, 1 }
  0x80   : > { %585 = vrot.lane.b32.xlu2 %v568_v19, %s1718_s15 }
  0x82   : > { %v1957_v3 = vpop.permute.xlu2 %536 }
  0x83   : > { %v737_v47 = vsel %vm733_vm3, %v1804_v0, %v1957_v3  ;;  %v691_v3 = vrot.slane %v689_v60, 1 }
  0x86   : > { %725 = vrot.lane.b32.xlu0 %v571_v2, %s1719_s16 }
  0x87   : > { %637 = vrot.lane.b32.xlu1 %v1916_v41, %s1722_s19 }
  0x88   : > { %656 = vrot.lane.b32.xlu2 %v571_v2, %s1720_s17 }
  0x89   : > { %v597_v11 = vpop.permute.xlu1 %596 }
  0x8a   : > { %v1964_v12 = vpop.permute.xlu2 %629 }
  0x8e   : > { %606 = vrot.lane.b32.xlu0 %v1899_v24, %s1716_s13 }
  0x8f   : > { %708 = vrot.lane.b32.xlu1 %v533_v13, %s1723_s20 }
  0x90   : > { %v576_v16 = vpop.permute.xlu0 %575  ;;  %727 = vrot.lane.b32.xlu2 %v1974_v17, %s1719_s16 }
  0x91   : > { %v718_v18 = vpop.permute.xlu1 %717 }
  0x92   : > { %v1985_v19 = vpop.permute.xlu2 %700 }
  0x96   : > { %677 = vrot.lane.b32.xlu0 %v1934_v50, %s2264_s12 }
  0x97   : > { %587 = vrot.lane.b32.xlu1 %v571_v2, %s1718_s15  ;;  %v687_v2 = vshrl.u32 %v1603_v58, 16 }
  0x98   : > { %v535_v20 = vpop.permute.xlu0 %534  ;;  %608 = vrot.lane.b32.xlu2 %v1934_v50, %s1716_s13 }
  0x99   : > { %v735_v22 = vsel %vm733_vm3, %v1807_v1, %v535_v20  ;;  %v628_v25 = vpop.permute.xlu1 %627  ;;  %v614_v1 = vpack.c.b16 %v613_v28, %v613_v28  ;;  %v692_v8 = vor.u32 %v691_v3, %v687_v2  ;;  %v715_v20 = vrot.slane %v685_v63, 1  ;;  %v1613_v63 = vld [vmem:[%s2259_s4 + $0x28] sm:$0xff] }
  0x9a   : > { %v752_v23 = vsel %vm750_vm4, %v735_v22, %v576_v16  ;;  %v580_v35 = vpop.permute.xlu2 %579  ;;  %v1621_v2 = vld [vmem:[%s2259_s4 + $0x68] sm:$0xff] }
  0x9b   : > { %v769_v26 = vsel %vm767_vm5, %v752_v23, %v597_v11  ;;  %v644_v38 = vrot.slane %v614_v1, 1  ;;  %v623_v42 = vshll.u32 %v614_v1, 16 }
  0x9c   : > { %v786_v29 = vsel %vm784_vm6, %v769_v26, %v628_v25 }
  0x9d   : > { %v803_v30 = vsel %vm801_vm7, %v786_v29, %v1936_v51  ;;  %v645_v44 = vsel %vm550_vm0, %v643_v37, %v644_v38  ;;  %v625_v46 = vrot.slane %v623_v42, 1 }
  0x9e   : > { %546 = vrot.lane.b32.xlu0 %v1916_v41, %s1721_s18  ;;  %v820_v33 = vsel %vm818_vm8, %v803_v30, %v1910_v32  ;;  %v616_v32 = vshrl.u32 %v1602_v27, 16  ;;  %v620_v41 = vrot.slane %v618_v31, 1 }
  0x9f   : > { %658 = vrot.lane.b32.xlu1 %v1974_v17, %s1720_s17 }
  0xa0   : > { %v699_v34 = vpop.permute.xlu0 %698  ;;  %679 = vrot.lane.b32.xlu2 %v1602_v27, %s2264_s12  ;;  %v621_v45 = vor.u32 %v620_v41, %v616_v32 }
  0xa1   : > { %v837_v36 = vsel %vm835_vm9, %v820_v33, %v699_v34  ;;  %v599_v40 = vpop.permute.xlu1 %598 }
  0xa2   : > { %v854_v39 = vsel %vm852_vm10, %v837_v36, %v718_v18  ;;  %v651_v51 = vpop.permute.xlu2 %650  ;;  %v626_v53 = vsel %vm437_vm1, %v621_v45, %v625_v46 }
  0xa3   : > { %1510 = vmatmul.msk.bf16.vlgmr.msra.gmra.mxu0 %vm905_vm11, %v854_v39  ;;  %1518 = vmatmul.msk.bf16.vlgmr.msra.gmra.mxu1 %vm905_vm11, %v854_v39 }
  0xa6   : > { %639 = vrot.lane.b32.xlu0 %v533_v13, %s1722_s19 }
  0xa7   : > { %729 = vrot.lane.b32.xlu1 %v645_v44, %s1719_s16 }
  0xa8   : > { %v578_v48 = vpop.permute.xlu0 %577  ;;  %548 = vrot.lane.b32.xlu2 %v533_v13, %s1721_s18  ;;  %v697_v13 = vsel %vm437_vm1, %v692_v8, %v696_v9 }
  0xa9   : > { %v670_v49 = vpop.permute.xlu1 %669  ;;  %v754_v52 = vsel %vm750_vm4, %v737_v47, %v578_v48 }
  0xaa   : > { %v771_v56 = vsel %vm767_vm5, %v754_v52, %v599_v40  ;;  %v722_v5 = vpop.permute.xlu2 %721 }
  0xab   : > { %v788_v0 = vsel %vm784_vm6, %v771_v56, %v1964_v12  ;;  %v1623_v56 = vld [vmem:[%s2259_s4 + $0x78] sm:$0xff] }
  0xac   : > { %1256 = vmatpush.bf16.msra.mxu3 %v1623_v56 }
  0xae   : > { %710 = vrot.lane.b32.xlu0 %v626_v53, %s1723_s20 }
  0xaf   : > { %610 = vrot.lane.b32.xlu1 %v1602_v27, %s1716_s13  ;;  %s1452_s13 = sshll.u32 %s2276_s22, 5 }
  0xb0   : > { %v649_v59 = vpop.permute.xlu0 %648  ;;  %641 = vrot.lane.b32.xlu2 %v626_v53, %s1722_s19 }
  0xb1   : > { %v805_v61 = vsel %vm801_vm7, %v788_v0, %v649_v59  ;;  %v539_v62 = vpop.permute.xlu1 %538 }
  0xb2   : > { %v822_v7 = vsel %vm818_vm8, %v805_v61, %v670_v49  ;;  %v739_v16 = vsel %vm733_vm3, %v1811_v4, %v539_v62  ;;  %v1614_v61 = vld [vmem:[%s2259_s4 + $0x30] sm:$0xff] }
  0xb3   : > { %v839_v11 = vsel %vm835_vm9, %v822_v7, %v1985_v19  ;;  %v756_v18 = vsel %vm750_vm4, %v739_v16, %v580_v35  ;;  %v714_v19 = vrot.slane %v1603_v58, 1  ;;  %v1622_v62 = vld [vmem:[%s2259_s4 + $0x70] sm:$0xff]  ;;  %1208 = vmatpush.bf16.msra.mxu2 %v1614_v61 }
  0xb4   : > { %1257 = vmatpush.bf16.msra.mxu3 %v1622_v62 }
  0xb5   : > { %v716_v25 = vsel %vm550_vm0, %v714_v19, %v715_v20  ;;  %v1618_v20 = vld [vmem:[%s2259_s4 + $0x50] sm:$0xff] }
  0xb6   : > { %589 = vrot.lane.b32.xlu0 %v1974_v17, %s1718_s15  ;;  %v603_v17 = vpop.permute.xlu2 %602  ;;  %s338_s15 = sadd.s32 %s1452_s13, %s1451_s30 }
  0xb7   : > { %681 = vrot.lane.b32.xlu1 %v1603_v58, %s2264_s12  ;;  %1209 = vmatpush.bf16.msra.mxu2 %v1613_v63  ;;  %s1453_s18 = sshll.u32 %s338_s15, 3 }
  0xb8   : > { %v720_v12 = vpop.permute.xlu0 %719  ;;  %712 = vrot.lane.b32.xlu2 %v697_v13, %s1723_s20  ;;  %1258 = vmatpush.bf16.msra.mxu3 %v1621_v2  ;;  %s2203_s19 = scalar_lea.vmem %s2261_s6, %s1453_s18 }
  0xb9   : > { %v856_v14 = vsel %vm852_vm10, %v839_v11, %v720_v12  ;;  %v632_v15 = vpop.permute.xlu1 %631  ;;  %v1612_v11 = vld [vmem:[%s2259_s4 + $0x20] sm:$0xff] }
  0xba   : > { %1511 = vmatmul.msk.bf16.gmra.mxu0 %vm905_vm11, %v856_v14  ;;  %1519 = vmatmul.msk.bf16.gmra.mxu1 %vm905_vm11, %v856_v14  ;;  %v1620_v12 = vld [vmem:[%s2259_s4 + $0x60] sm:$0xff]  ;;  %v1611_v14 = vld [vmem:[%s2259_s4 + $0x18] sm:$0xff] }
  0xbb   : > { %1210 = vmatpush.bf16.msra.mxu2 %v1612_v11 }
  0xbc   : > { %1259 = vmatpush.bf16.msra.mxu3 %v1620_v12 }
  0xbe   : > { %660 = vrot.lane.b32.xlu0 %v645_v44, %s1720_s17  ;;  %v674_v28 = vpop.permute.xlu2 %673 }
  0xbf   : > { %1211 = vmatpush.bf16.msra.mxu2 %v1611_v14 }
  0xc0   : > { %v601_v21 = vpop.permute.xlu0 %600 }
  0xc1   : > { %v773_v22 = vsel %vm767_vm5, %v756_v18, %v601_v21  ;;  %v703_v23 = vpop.permute.xlu1 %702 }
  0xc2   : > { %v790_v26 = vsel %vm784_vm6, %v773_v22, %v632_v15  ;;  %v1619_v15 = vld [vmem:[%s2259_s4 + $0x58] sm:$0xff] }
  0xc3   : > { %v807_v27 = vsel %vm801_vm7, %v790_v26, %v651_v51  ;;  %1260 = vmatpush.bf16.msra.mxu3 %v1619_v15 }
  0xc6   : > { %731 = vrot.lane.b32.xlu0 %v716_v25, %s1719_s16  ;;  %v543_v35 = vpop.permute.xlu2 %542  ;;  %v1617_v25 = vld [vmem:[%s2259_s4 + $0x48] sm:$0xff] }
  0xc7   : > { %v743_v49 = vsel %vm733_vm3, %v1857_v54, %v543_v35  ;;  %1261 = vmatpush.bf16.msra.mxu3 %v1618_v20 }
  0xc8   : > { %v672_v4 = vpop.permute.xlu0 %671 }
  0xc9   : > { %v824_v29 = vsel %vm818_vm8, %v807_v27, %v672_v4  ;;  %v582_v1 = vpop.permute.xlu1 %581 }
  0xca   : > { %v841_v30 = vsel %vm835_vm9, %v824_v29, %v703_v23  ;;  %v1609_v23 = vld [vmem:[%s2259_s4 + $0x8] sm:$0xff] }
  0xcb   : > { %v858_v31 = vsel %vm852_vm10, %v841_v30, %v722_v5  ;;  %1262 = vmatpush.bf16.msra.mxu3 %v1617_v25 }
  0xcc   : > { %1512 = vmatmul.msk.bf16.gmra.mxu0 %vm905_vm11, %v858_v31  ;;  %1520 = vmatmul.msk.bf16.gmra.mxu1 %vm905_vm11, %v858_v31  ;;  %v1616_v31 = vld [vmem:[%s2259_s4 + $0x40] sm:$0xff] }
  0xce   : > { %v636_v41 = vpop.permute.xlu2 %635 }
  0xcf   : > { %1263 = vmatpush.bf16.msra.mxu3 %v1616_v31 }
  0xd0   : > { %v541_v33 = vpop.permute.xlu0 %540 }
  0xd1   : > { %v653_v34 = vpop.permute.xlu1 %652  ;;  %v741_v36 = vsel %vm733_vm3, %v1842_v43, %v541_v33 }
  0xd2   : > { %v758_v37 = vsel %vm750_vm4, %v741_v36, %v582_v1  ;;  %v1608_v1 = vld [vmem:[%s2259_s4] sm:$0xff] }
  0xd3   : > { %v775_v39 = vsel %vm767_vm5, %v758_v37, %v603_v17 }
  0xd6   : > { %v707_v43 = vpop.permute.xlu2 %706 }
  0xd8   : > { %v634_v38 = vpop.permute.xlu0 %633 }
  0xd9   : > { %v792_v40 = vsel %vm784_vm6, %v775_v39, %v634_v38  ;;  %v724_v32 = vpop.permute.xlu1 %723 }
  0xda   : > { %v809_v42 = vsel %vm801_vm7, %v792_v40, %v653_v34 }
  0xdb   : > { %v826_v44 = vsel %vm818_vm8, %v809_v42, %v674_v28 }
  0xde   : > { %v586_v59 = vpop.permute.xlu2 %585 }
  0xe0   : > { %v705_v45 = vpop.permute.xlu0 %704 }
  0xe1   : > { %v843_v46 = vsel %vm835_vm9, %v826_v44, %v705_v45  ;;  %v605_v48 = vpop.permute.xlu1 %604  ;;  %v874_v44 = vld [vmem:[%s2258_s3] sm:$0x3] }
  0xe2   : > { %v860_v47 = vsel %vm852_vm10, %v843_v46, %v724_v32 }
  0xe3   : > { %1513 = vmatmul.msk.bf16.gmra.mxu0 %vm905_vm11, %v860_v47  ;;  %1521 = vmatmul.msk.bf16.gmra.mxu1 %vm905_vm11, %v860_v47 }
  0xe6   : > { %v657_v9 = vpop.permute.xlu2 %656 }
  0xe8   : > { %v584_v51 = vpop.permute.xlu0 %583 }
  0xe9   : > { %v676_v52 = vpop.permute.xlu1 %675  ;;  %v760_v53 = vsel %vm750_vm4, %v743_v49, %v584_v51  ;;  %v2145_v49 = vperm.slane %v874_v44, 0  ;;  %v2147_v51 = vperm.slane %v874_v44, 1 }
  0xea   : > { %v777_v57 = vsel %vm767_vm5, %v760_v53, %v605_v48 }
  0xeb   : > { %v794_v54 = vsel %vm784_vm6, %v777_v57, %v636_v41 }
  0xee   : > { %v728_v21 = vpop.permute.xlu2 %727 }
  0xf0   : > { %v655_v58 = vpop.permute.xlu0 %654 }
  0xf1   : > { %v811_v0 = vsel %vm801_vm7, %v794_v54, %v655_v58  ;;  %v545_v60 = vpop.permute.xlu1 %544 }
  0xf2   : > { %v828_v3 = vsel %vm818_vm8, %v811_v0, %v676_v52  ;;  %v745_v13 = vsel %vm733_vm3, %v1883_v10, %v545_v60  ;;  %v1610_v10 = vld [vmem:[%s2259_s4 + $0x10] sm:$0xff] }
  0xf3   : > { %v845_v5 = vsel %vm835_vm9, %v828_v3, %v707_v43  ;;  %v762_v16 = vsel %vm750_vm4, %v745_v13, %v586_v59  ;;  %1212 = vmatpush.bf16.msra.mxu2 %v1610_v10 }
  0xf6   : > { %v609_v33 = vpop.permute.xlu2 %608 }
  0xf7   : > { %1213 = vmatpush.bf16.msra.mxu2 %v1609_v23 }
  0xf8   : > { %v726_v6 = vpop.permute.xlu0 %725 }
  0xf9   : > { %v862_v7 = vsel %vm852_vm10, %v845_v5, %v726_v6  ;;  %v638_v8 = vpop.permute.xlu1 %637 }
  0xfa   : > { %1514 = vmatmul.msk.bf16.gmra.mxu0 %vm905_vm11, %v862_v7  ;;  %1522 = vmatmul.msk.bf16.gmra.mxu1 %vm905_vm11, %v862_v7 }
  0xfb   : > { %1214 = vmatpush.bf16.msra.mxu2 %v1608_v1 }
  0xfe   : > { %v680_v39 = vpop.permute.xlu2 %679 }
 0x100   : > { %v607_v17 = vpop.permute.xlu0 %606 }
 0x101   : > { %v779_v18 = vsel %vm767_vm5, %v762_v16, %v607_v17  ;;  %v709_v19 = vpop.permute.xlu1 %708 }
 0x102   : > { %v796_v22 = vsel %vm784_vm6, %v779_v18, %v638_v8 }
 0x103   : > { %v813_v26 = vsel %vm801_vm7, %v796_v22, %v657_v9 }
 0x106   : > { %v549_v43 = vpop.permute.xlu2 %548 }
 0x107   : > { %v749_v58 = vsel %vm733_vm3, %v1934_v50, %v549_v43 }
 0x108   : > { %v678_v27 = vpop.permute.xlu0 %677 }
 0x109   : > { %v830_v4 = vsel %vm818_vm8, %v813_v26, %v678_v27  ;;  %v588_v30 = vpop.permute.xlu1 %587 }
 0x10a   : > { %v847_v28 = vsel %vm835_vm9, %v830_v4, %v709_v19 }
 0x10b   : > { %v864_v29 = vsel %vm852_vm10, %v847_v28, %v728_v21 }
 0x10c   : > { %1515 = vmatmul.msk.bf16.gmra.mxu0 %vm905_vm11, %v864_v29  ;;  %1523 = vmatmul.msk.bf16.gmra.mxu1 %vm905_vm11, %v864_v29 }
 0x10e   : > { %v642_v5 = vpop.permute.xlu2 %641 }
 0x110   : > { %v547_v34 = vpop.permute.xlu0 %546 }
 0x111   : > { %v747_v35 = vsel %vm733_vm3, %v1899_v24, %v547_v34  ;;  %v659_v36 = vpop.permute.xlu1 %658 }
 0x112   : > { %v764_v37 = vsel %vm750_vm4, %v747_v35, %v588_v30 }
 0x113   : > { %v781_v40 = vsel %vm767_vm5, %v764_v37, %v609_v33 }
 0x116   : > { %v713_v14 = vpop.permute.xlu2 %712 }
 0x118   : > { %v640_v38 = vpop.permute.xlu0 %639 }
 0x119   : > { %v798_v32 = vsel %vm784_vm6, %v781_v40, %v640_v38  ;;  %v730_v42 = vpop.permute.xlu1 %729 }
 0x11a   : > { %v815_v41 = vsel %vm801_vm7, %v798_v32, %v659_v36 }
 0x11b   : > { %v832_v24 = vsel %vm818_vm8, %v815_v41, %v680_v39 }
 0x120   : > { %v938_v45 = vpop.f32.mrf.mxu0  ;;  %v987_v46 = vpop.f32.mrf.mxu1 }
 0x121   : > { %v711_v47 = vpop.permute.xlu0 %710  ;;  %v939_v53 = vadd.f32 %v938_v45, %v2145_v49  ;;  %v988_v55 = vadd.f32 %v987_v46, %v2147_v51  ;;  %v611_v60 = vpop.permute.xlu1 %610 }
 0x122   : > { %v849_v48 = vsel %vm835_vm9, %v832_v24, %v711_v47 }
 0x123   : > { %v866_v52 = vsel %vm852_vm10, %v849_v48, %v730_v42  ;;  %v1027_v61 = vmax.f32 %v939_v53, 0.0  ;;  %v1028_v62 = vmax.f32 %v988_v55, 0.0 }
 0x124   : > { %1516 = vmatmul.msk.bf16.gmra.mxu0 %vm905_vm11, %v866_v52  ;;  %1524 = vmatmul.msk.bf16.gmra.mxu1 %vm905_vm11, %v866_v52 }
 0x128   : > { %v940_v56 = vpop.f32.mrf.mxu0  ;;  %v989_v57 = vpop.f32.mrf.mxu1 }
 0x129   : > { %v941_v59 = vadd.f32 %v940_v56, %v2145_v49  ;;  %v990_v54 = vadd.f32 %v989_v57, %v2147_v51  ;;  %v590_v0 = vpop.permute.xlu0 %589  ;;  %v682_v12 = vpop.permute.xlu1 %681 }
 0x12a   : > { %v766_v3 = vsel %vm750_vm4, %v749_v58, %v590_v0 }
 0x12b   : > { %v1029_v63 = vmax.f32 %v941_v59, 0.0  ;;  %v1030_v2 = vmax.f32 %v990_v54, 0.0  ;;  %v783_v8 = vsel %vm767_vm5, %v766_v3, %v611_v60 }
 0x12c   : > { %v800_v9 = vsel %vm784_vm6, %v783_v8, %v642_v5 }
 0x12d   : > { %v1059_v6 = vpack.c.bf16 %v1029_v63, %v1027_v61  ;;  %v1060_v7 = vpack.c.bf16 %v1030_v2, %v1028_v62 }
 0x12f   : > { %1215 = vmatmul.bf16.vlgmr.msra.gmra.mxu2 %v1059_v6  ;;  %1264 = vmatmul.bf16.vlgmr.msra.gmra.mxu3 %v1060_v7 }
 0x131   : > { %v661_v50 = vpop.permute.xlu0 %660 }
 0x132   : > { %v817_v11 = vsel %vm801_vm7, %v800_v9, %v661_v50 }
 0x133   : > { %v834_v13 = vsel %vm818_vm8, %v817_v11, %v682_v12 }
 0x134   : > { %v851_v17 = vsel %vm835_vm9, %v834_v13, %v713_v14 }
 0x137   : > { %v943_v15 = vpop.f32.mrf.mxu0  ;;  %v992_v16 = vpop.f32.mrf.mxu1 }
 0x138   : > { %v944_v10 = vadd.f32 %v943_v15, %v2145_v49  ;;  %v993_v20 = vadd.f32 %v992_v16, %v2147_v51 }
 0x139   : > { %v732_v18 = vpop.permute.xlu0 %731 }
 0x13a   : > { %v868_v19 = vsel %vm852_vm10, %v851_v17, %v732_v18  ;;  %v1031_v26 = vmax.f32 %v944_v10, 0.0  ;;  %v1032_v27 = vmax.f32 %v993_v20, 0.0 }
 0x13b   : > { %1517 = vmatmul.msk.bf16.gmra.mxu0 %vm905_vm11, %v868_v19  ;;  %1525 = vmatmul.msk.bf16.gmra.mxu1 %vm905_vm11, %v868_v19 }
 0x13f   : > { %v945_v21 = vpop.f32.mrf.mxu0  ;;  %v994_v22 = vpop.f32.mrf.mxu1 }
 0x140   : > { %v946_v23 = vadd.f32 %v945_v21, %v2145_v49  ;;  %v995_v25 = vadd.f32 %v994_v22, %v2147_v51 }
 0x142   : > { %v1033_v4 = vmax.f32 %v946_v23, 0.0  ;;  %v1034_v28 = vmax.f32 %v995_v25, 0.0 }
 0x144   : > { %v1061_v29 = vpack.c.bf16 %v1033_v4, %v1031_v26  ;;  %v1062_v30 = vpack.c.bf16 %v1034_v28, %v1032_v27 }
 0x146   : > { %1220 = vmatmul.bf16.gmra.mxu2 %v1061_v29  ;;  %1269 = vmatmul.bf16.gmra.mxu3 %v1062_v30 }
 0x149   : > { %v948_v1 = vpop.f32.mrf.mxu0  ;;  %v997_v31 = vpop.f32.mrf.mxu1 }
 0x14a   : > { %v949_v33 = vadd.f32 %v948_v1, %v2145_v49  ;;  %v998_v34 = vadd.f32 %v997_v31, %v2147_v51 }
 0x14c   : > { %v1035_v39 = vmax.f32 %v949_v33, 0.0  ;;  %v1036_v40 = vmax.f32 %v998_v34, 0.0 }
 0x151   : > { %v950_v35 = vpop.f32.mrf.mxu0  ;;  %v999_v36 = vpop.f32.mrf.mxu1 }
 0x152   : > { %v951_v37 = vadd.f32 %v950_v35, %v2145_v49  ;;  %v1000_v38 = vadd.f32 %v999_v36, %v2147_v51 }
 0x154   : > { %v1037_v32 = vmax.f32 %v951_v37, 0.0  ;;  %v1038_v41 = vmax.f32 %v1000_v38, 0.0 }
 0x156   : > { %v1063_v42 = vpack.c.bf16 %v1037_v32, %v1035_v39  ;;  %v1064_v44 = vpack.c.bf16 %v1038_v41, %v1036_v40  ;;  %v2197_v39 = vld [vmem:[%s2260_s5] ss:$0 sm:$0xff] }
 0x158   : > { %1225 = vmatmul.bf16.gmra.mxu2 %v1063_v42  ;;  %1274 = vmatmul.bf16.gmra.mxu3 %v1064_v44 }
 0x160   : > { %v953_v45 = vpop.f32.mrf.mxu0  ;;  %v1002_v46 = vpop.f32.mrf.mxu1 }
 0x161   : > { %v954_v24 = vadd.f32 %v953_v45, %v2145_v49  ;;  %v1003_v47 = vadd.f32 %v1002_v46, %v2147_v51 }
 0x163   : > { %v1039_v55 = vmax.f32 %v954_v24, 0.0  ;;  %v1040_v56 = vmax.f32 %v1003_v47, 0.0 }
 0x168   : > { %v955_v48 = vpop.f32.mrf.mxu0  ;;  %v1004_v43 = vpop.f32.mrf.mxu1 }
 0x169   : > { %v956_v52 = vadd.f32 %v955_v48, %v2145_v49  ;;  %v1005_v53 = vadd.f32 %v1004_v43, %v2147_v51 }
 0x16b   : > { %v1041_v57 = vmax.f32 %v956_v52, 0.0  ;;  %v1042_v58 = vmax.f32 %v1005_v53, 0.0 }
 0x16d   : > { %v1065_v59 = vpack.c.bf16 %v1041_v57, %v1039_v55  ;;  %v1066_v54 = vpack.c.bf16 %v1042_v58, %v1040_v56 }
 0x16f   : > { %1230 = vmatmul.bf16.gmra.mxu2 %v1065_v59  ;;  %1279 = vmatmul.bf16.gmra.mxu3 %v1066_v54 }
 0x177   : > { %v958_v0 = vpop.f32.mrf.mxu0  ;;  %v1007_v60 = vpop.f32.mrf.mxu1 }
 0x178   : > { %v959_v61 = vadd.f32 %v958_v0, %v2145_v49  ;;  %v1008_v62 = vadd.f32 %v1007_v60, %v2147_v51 }
 0x17a   : > { %v1043_v6 = vmax.f32 %v959_v61, 0.0  ;;  %v1044_v7 = vmax.f32 %v1008_v62, 0.0 }
 0x17f   : > { %v960_v63 = vpop.f32.mrf.mxu0  ;;  %v1009_v2 = vpop.f32.mrf.mxu1 }
 0x180   : > { %v961_v3 = vadd.f32 %v960_v63, %v2145_v49  ;;  %v1010_v5 = vadd.f32 %v1009_v2, %v2147_v51 }
 0x182   : > { %v1045_v8 = vmax.f32 %v961_v3, 0.0  ;;  %v1046_v50 = vmax.f32 %v1010_v5, 0.0 }
 0x184   : > { %v1067_v9 = vpack.c.bf16 %v1045_v8, %v1043_v6  ;;  %v1068_v11 = vpack.c.bf16 %v1046_v50, %v1044_v7 }
 0x186   : > { %1235 = vmatmul.bf16.gmra.mxu2 %v1067_v9  ;;  %1284 = vmatmul.bf16.gmra.mxu3 %v1068_v11 }
 0x189   : > { %v963_v12 = vpop.f32.mrf.mxu0  ;;  %v1012_v13 = vpop.f32.mrf.mxu1 }
 0x18a   : > { %v964_v14 = vadd.f32 %v963_v12, %v2145_v49  ;;  %v1013_v15 = vadd.f32 %v1012_v13, %v2147_v51 }
 0x18c   : > { %v1047_v10 = vmax.f32 %v964_v14, 0.0  ;;  %v1048_v20 = vmax.f32 %v1013_v15, 0.0 }
 0x191   : > { %v965_v16 = vpop.f32.mrf.mxu0  ;;  %v1014_v17 = vpop.f32.mrf.mxu1 }
 0x192   : > { %v966_v18 = vadd.f32 %v965_v16, %v2145_v49  ;;  %v1015_v19 = vadd.f32 %v1014_v17, %v2147_v51 }
 0x194   : > { %v1049_v21 = vmax.f32 %v966_v18, 0.0  ;;  %v1050_v22 = vmax.f32 %v1015_v19, 0.0 }
 0x196   : > { %v1069_v23 = vpack.c.bf16 %v1049_v21, %v1047_v10  ;;  %v1070_v25 = vpack.c.bf16 %v1050_v22, %v1048_v20 }
 0x198   : > { %1240 = vmatmul.bf16.gmra.mxu2 %v1069_v23  ;;  %1289 = vmatmul.bf16.gmra.mxu3 %v1070_v25 }
 0x1a1   : > { %v968_v26 = vpop.f32.mrf.mxu0  ;;  %v1017_v27 = vpop.f32.mrf.mxu1 }
 0x1a2   : > { %v969_v4 = vadd.f32 %v968_v26, %v2145_v49  ;;  %v1018_v28 = vadd.f32 %v1017_v27, %v2147_v51 }
 0x1a4   : > { %v1051_v33 = vmax.f32 %v969_v4, 0.0  ;;  %v1052_v34 = vmax.f32 %v1018_v28, 0.0 }
 0x1a9   : > { %v970_v29 = vpop.f32.mrf.mxu0  ;;  %v1019_v30 = vpop.f32.mrf.mxu1 }
 0x1aa   : > { %v971_v1 = vadd.f32 %v970_v29, %v2145_v49  ;;  %v1020_v31 = vadd.f32 %v1019_v30, %v2147_v51 }
 0x1ac   : > { %v1053_v35 = vmax.f32 %v971_v1, 0.0  ;;  %v1054_v36 = vmax.f32 %v1020_v31, 0.0 }
 0x1ae   : > { %v1071_v37 = vpack.c.bf16 %v1053_v35, %v1051_v33  ;;  %v1072_v38 = vpack.c.bf16 %v1054_v36, %v1052_v34 }
 0x1b0   : > { %1245 = vmatmul.bf16.gmra.mxu2 %v1071_v37  ;;  %1294 = vmatmul.bf16.gmra.mxu3 %v1072_v38 }
 0x1b2   : > { %v1216_v40 = vpop.f32.mrf.mxu2  ;;  %v1265_v32 = vpop.f32.mrf.mxu3 }
 0x1b3   : > { %v1217_v41 = vadd.f32 %v2197_v39, %v1216_v40 }
 0x1b5   : > { %v1266_v42 = vadd.f32 %v1265_v32, %v1217_v41 }
 0x1b7   : > { %1305 = vst [vmem:[%s2203_s19] sm:$0xff] %v1266_v42 }
 0x1b8   : > { %v973_v44 = vpop.f32.mrf.mxu0  ;;  %v1022_v45 = vpop.f32.mrf.mxu1 }
 0x1b9   : > { %v974_v43 = vadd.f32 %v973_v44, %v2145_v49  ;;  %v1023_v52 = vadd.f32 %v1022_v45, %v2147_v51 }
 0x1ba   : > { %v1218_v46 = vpop.f32.mrf.mxu2  ;;  %v1267_v47 = vpop.f32.mrf.mxu3 }
 0x1bb   : > { %v1219_v24 = vadd.f32 %v2197_v39, %v1218_v46  ;;  %v1055_v58 = vmax.f32 %v974_v43, 0.0  ;;  %v1056_v59 = vmax.f32 %v1023_v52, 0.0 }
 0x1bd   : > { %v1268_v48 = vadd.f32 %v1267_v47, %v1219_v24 }
 0x1bf   : > { %1306 = vst [vmem:[%s2203_s19 + $0x8] sm:$0xff] %v1268_v48 }
 0x1c0   : > { %v975_v53 = vpop.f32.mrf.mxu0  ;;  %v1024_v55 = vpop.f32.mrf.mxu1 }
 0x1c1   : > { %v976_v56 = vadd.f32 %v975_v53, %v2145_v49  ;;  %v1025_v57 = vadd.f32 %v1024_v55, %v2147_v51 }
 0x1c3   : > { %v1057_v54 = vmax.f32 %v976_v56, 0.0  ;;  %v1058_v0 = vmax.f32 %v1025_v57, 0.0 }
 0x1c5   : > { %v1073_v60 = vpack.c.bf16 %v1057_v54, %v1055_v58  ;;  %v1074_v61 = vpack.c.bf16 %v1058_v0, %v1056_v59 }
 0x1c7   : > { %1250 = vmatmul.bf16.gmra.mxu2 %v1073_v60  ;;  %1299 = vmatmul.bf16.gmra.mxu3 %v1074_v61 }
 0x1c9   : > { %v1221_v62 = vpop.f32.mrf.mxu2  ;;  %v1270_v63 = vpop.f32.mrf.mxu3 }
 0x1ca   : > { %v1222_v2 = vadd.f32 %v2197_v39, %v1221_v62 }
 0x1cc   : > { %v1271_v3 = vadd.f32 %v1270_v63, %v1222_v2 }
 0x1ce   : > { %1307 = vst [vmem:[%s2203_s19 + $0x10] sm:$0xff] %v1271_v3 }
 0x1d1   : > { %v1223_v49 = vpop.f32.mrf.mxu2  ;;  %v1272_v5 = vpop.f32.mrf.mxu3 }
 0x1d2   : > { %v1224_v51 = vadd.f32 %v2197_v39, %v1223_v49 }
 0x1d4   : > { %v1273_v6 = vadd.f32 %v1272_v5, %v1224_v51 }
 0x1d6   : > { %1308 = vst [vmem:[%s2203_s19 + $0x18] sm:$0xff] %v1273_v6 }
 0x1db   : > { %v1226_v7 = vpop.f32.mrf.mxu2  ;;  %v1275_v8 = vpop.f32.mrf.mxu3 }
 0x1dc   : > { %v1227_v50 = vadd.f32 %v2197_v39, %v1226_v7 }
 0x1de   : > { %v1276_v9 = vadd.f32 %v1275_v8, %v1227_v50 }
 0x1e0   : > { %1309 = vst [vmem:[%s2203_s19 + $0x20] sm:$0xff] %v1276_v9 }
 0x1e3   : > { %v1228_v11 = vpop.f32.mrf.mxu2  ;;  %v1277_v13 = vpop.f32.mrf.mxu3 }
 0x1e4   : > { %v1229_v12 = vadd.f32 %v2197_v39, %v1228_v11 }
 0x1e6   : > { %v1278_v14 = vadd.f32 %v1277_v13, %v1229_v12 }
 0x1e8   : > { %1310 = vst [vmem:[%s2203_s19 + $0x28] sm:$0xff] %v1278_v14 }
 0x1f2   : > { %v1231_v15 = vpop.f32.mrf.mxu2  ;;  %v1280_v16 = vpop.f32.mrf.mxu3 }
 0x1f3   : > { %v1232_v17 = vadd.f32 %v2197_v39, %v1231_v15 }
 0x1f5   : > { %v1281_v18 = vadd.f32 %v1280_v16, %v1232_v17 }
 0x1f7   : > { %1311 = vst [vmem:[%s2203_s19 + $0x30] sm:$0xff] %v1281_v18 }
 0x1fa   : > { %v1233_v19 = vpop.f32.mrf.mxu2  ;;  %v1282_v20 = vpop.f32.mrf.mxu3 }
 0x1fb   : > { %v1234_v10 = vadd.f32 %v2197_v39, %v1233_v19 }
 0x1fd   : > { %v1283_v21 = vadd.f32 %v1282_v20, %v1234_v10 }
 0x1ff   : > { %1312 = vst [vmem:[%s2203_s19 + $0x38] sm:$0xff] %v1283_v21 }
 0x209   : > { %v1236_v22 = vpop.f32.mrf.mxu2  ;;  %v1285_v23 = vpop.f32.mrf.mxu3 }
 0x20a   : > { %v1237_v25 = vadd.f32 %v2197_v39, %v1236_v22 }
 0x20c   : > { %v1286_v26 = vadd.f32 %v1285_v23, %v1237_v25 }
 0x20e   : > { %1313 = vst [vmem:[%s2203_s19 + $0x40] sm:$0xff] %v1286_v26 }
 0x211   : > { %v1238_v27 = vpop.f32.mrf.mxu2  ;;  %v1287_v28 = vpop.f32.mrf.mxu3 }
 0x212   : > { %v1239_v4 = vadd.f32 %v2197_v39, %v1238_v27 }
 0x214   : > { %v1288_v29 = vadd.f32 %v1287_v28, %v1239_v4 }
 0x216   : > { %1314 = vst [vmem:[%s2203_s19 + $0x48] sm:$0xff] %v1288_v29 }
 0x21b   : > { %v1241_v30 = vpop.f32.mrf.mxu2  ;;  %v1290_v1 = vpop.f32.mrf.mxu3 }
 0x21c   : > { %v1242_v31 = vadd.f32 %v2197_v39, %v1241_v30 }
 0x21e   : > { %v1291_v33 = vadd.f32 %v1290_v1, %v1242_v31 }
 0x220   : > { %1315 = vst [vmem:[%s2203_s19 + $0x50] sm:$0xff] %v1291_v33 }
 0x223   : > { %v1243_v34 = vpop.f32.mrf.mxu2  ;;  %v1292_v36 = vpop.f32.mrf.mxu3 }
 0x224   : > { %v1244_v35 = vadd.f32 %v2197_v39, %v1243_v34 }
 0x226   : > { %v1293_v37 = vadd.f32 %v1292_v36, %v1244_v35 }
 0x228   : > { %1316 = vst [vmem:[%s2203_s19 + $0x58] sm:$0xff] %v1293_v37 }
 0x233   : > { %v1246_v38 = vpop.f32.mrf.mxu2  ;;  %v1295_v40 = vpop.f32.mrf.mxu3 }
 0x234   : > { %v1247_v32 = vadd.f32 %v2197_v39, %v1246_v38 }
 0x236   : > { %v1296_v41 = vadd.f32 %v1295_v40, %v1247_v32 }
 0x238   : > { %1317 = vst [vmem:[%s2203_s19 + $0x60] sm:$0xff] %v1296_v41 }
 0x23b   : > { %v1248_v42 = vpop.f32.mrf.mxu2  ;;  %v1297_v45 = vpop.f32.mrf.mxu3 }
 0x23c   : > { %v1249_v44 = vadd.f32 %v2197_v39, %v1248_v42 }
 0x23e   : > { %v1298_v46 = vadd.f32 %v1297_v45, %v1249_v44 }
 0x240   : > { %1318 = vst [vmem:[%s2203_s19 + $0x68] sm:$0xff] %v1298_v46 }
 0x24a   : > { %v1251_v24 = vpop.f32.mrf.mxu2  ;;  %v1300_v47 = vpop.f32.mrf.mxu3 }
 0x24b   : > { %v1252_v48 = vadd.f32 %v2197_v39, %v1251_v24 }
 0x24d   : > { %v1301_v43 = vadd.f32 %v1300_v47, %v1252_v48 }
 0x24f   : > { %1319 = vst [vmem:[%s2203_s19 + $0x70] sm:$0xff] %v1301_v43 }
 0x252   : > { %v1253_v52 = vpop.f32.mrf.mxu2  ;;  %v1302_v55 = vpop.f32.mrf.mxu3 }
 0x253   : > { %v1254_v53 = vadd.f32 %v2197_v39, %v1253_v52 }
 0x255   : > { %v1303_v56 = vadd.f32 %v1302_v55, %v1254_v53 }
 0x257   : > { %1320 = vst [vmem:[%s2203_s19 + $0x78] sm:$0xff] %v1303_v56 }
 0x258 PF: > { %s16_s25 = sadd.s32 1, %s1714_s25   ;;  %s2265_s21 = smov %s1706_s23 }
 0x259   : > { %p13_p9 = scmp.ge.s32.totalorder %s16_s25, 6   ;;  %s2266_s22 = smov %s1710_s24 }
 0x25a   : > { %s2267_s23 = smov %s2270_s26  ;;  %s2268_s24 = smov %s2274_s27 }
 0x25b   :  { %15 = sbr.rel (!%p13_p9) target bundleno = 3 (0x3), region = 77 }

</bundles_post_ra>
